<compile_context>
chip_gen: v6e
topology: v6e:2x2x1
jax: 0.10.0
libtpu: 0.0.40
codegen_flags: <defaults>
</compile_context>

<pallas_src>
import functools

import numpy as np
import jax
import jax.numpy as jnp
from jax.experimental import pallas as pl
from jax.experimental.pallas import tpu as pltpu


def _bilinear_matrix(n_in, n_out):
    """1-D matrix R (n_out, n_in) so that R @ v == F.interpolate(v, mode='bilinear',
    align_corners=True) along that axis."""
    if n_out == 1:
        src = np.zeros((1,), dtype=np.float64)
    else:
        src = np.arange(n_out, dtype=np.float64) * (n_in - 1) / (n_out - 1)
    lo = np.clip(np.floor(src).astype(np.int64), 0, n_in - 1)
    hi = np.minimum(lo + 1, n_in - 1)
    frac = src - lo
    r = np.zeros((n_out, n_in), dtype=np.float32)
    r[np.arange(n_out), lo] += (1.0 - frac).astype(np.float32)
    r[np.arange(n_out), hi] += frac.astype(np.float32)
    return r


def _winsplit_resize_kernel(x_hbm, rr_ref, rc_ref, o_ref, strip_ref, sem,
                            *, win, wout, step, cw, gt):
    """One (G-tile, row-window) per grid step: strip DMA -> shared row-resize
    matmul -> per-column-window column-resize matmul -> lane-aligned stores."""
    gi = pl.program_id(0)            # G-tile index
    ri = pl.program_id(1)            # row-window index
    rs = ri * step                   # window row start (pixels)
    g0 = gi * gt                     # channel-tile start

    # Fetch the (Gt, WIN, W) row strip in the image's native (G, H, W) layout.
    cp = pltpu.make_async_copy(
        x_hbm.at[pl.ds(g0, gt), pl.ds(rs, win), :],
        strip_ref, sem)
    cp.start()

    # Broadcast the tiny separable resize matrices over the G batch once per
    # grid step (hoisted out of the column-window loop); overlaps the DMA.
    rr_b = jnp.broadcast_to(rr_ref[...][None, :, :], (gt, wout, win))   # R
    rc_b = jnp.broadcast_to(rc_ref[...][None, :, :], (gt, win, wout))   # R^T

    cp.wait()
    strip = strip_ref[...]                                   # (Gt, WIN, W)

    # Row pass ONCE for the whole strip (shared by all CW column windows):
    # batched over G, contracting the WIN window rows.  N = W is large, so
    # the MXU shape is healthy and the cost is amortized over CW windows.
    t = jnp.einsum('gpr,grw->gpw', rr_b, strip,
                   preferred_element_type=jnp.float32)       # (Gt, WOUT, W)
    t = t.astype(strip.dtype)

    # Column pass per window.  Column starts are compile-time constants, so
    # these are static slices (no dynamic lane indexing, no relayout search).
    for ci in range(cw):
        cs = ci * step
        t_win = t[:, :, cs:cs + win]                         # (Gt, WOUT, WIN)
        o = jnp.einsum('gpc,gco->gpo', t_win, rc_b,
                       preferred_element_type=jnp.float32)   # (Gt, WOUT, WOUT)
        o_ref[ci] = o.astype(o_ref.dtype)


def _winsplit_copy_kernel(x_hbm, o_ref, strip_ref, sem, *, win, step, cw, gt):
    """winZipSize == winsize: pure gather, no resize matmuls (DMA-bound path)."""
    gi = pl.program_id(0)
    ri = pl.program_id(1)
    cp = pltpu.make_async_copy(
        x_hbm.at[pl.ds(gi * gt, gt), pl.ds(ri * step, win), :],
        strip_ref, sem)
    cp.start()
    cp.wait()
    strip = strip_ref[...]                                   # (Gt, WIN, W)
    for ci in range(cw):
        cs = ci * step
        o_ref[ci] = strip[:, :, cs:cs + win].astype(o_ref.dtype)


class WinSplit:
    """JAX/Pallas port of the PyTorch winSplit module (forward pass only)."""

    def __init__(self, imgsize=518, patchsize=14, winsize=5, stride=1,
                 winZipSize=7, num_g_tiles=1):
        self.imgsize = imgsize
        self.patchsize = patchsize
        self.winsize = winsize
        self.stride = stride
        self.winZipSize = winZipSize
        self.num_g_tiles = num_g_tiles          # G (=B*C) tiling for VMEM sizing

        self.win_px = winsize * patchsize       # input window size (pixels)
        self.step_px = stride * patchsize       # window stride (pixels)
        self.wout_px = winZipSize * patchsize   # output window size (pixels)

        self.masklist, self.pmasklist = self.makemask()
        starts = list(range(0, imgsize - self.win_px + 1, self.step_px))
        self.num_row_windows = len(starts)
        self.num_col_windows = len(starts)
        self.num_windows = len(self.masklist)
        assert self.num_windows == self.num_row_windows * self.num_col_windows

        self.needs_resize = (winZipSize != winsize)
        r = _bilinear_matrix(self.win_px, self.wout_px)      # (WOUT, WIN)
        self.r_row = jnp.asarray(r)                          # row-pass weights
        self.r_col_t = jnp.asarray(r.T)                      # col-pass weights (R^T)

    def makemask(self):
        winsize = self.winsize * self.patchsize
        stride = self.stride * self.patchsize
        masklist, pmasklist = [], []
        for row in range(0, self.imgsize - winsize + 1, stride):
            for col in range(0, self.imgsize - winsize + 1, stride):
                masklist.append([row, row + winsize, col, col + winsize])
                pmasklist.append([row // self.patchsize,
                                  (row + winsize) // self.patchsize,
                                  col // self.patchsize,
                                  (col + winsize) // self.patchsize])
        return masklist, pmasklist

    def forward(self, x):
        B, C, H, W = x.shape
        assert H == W == self.imgsize
        G = B * C
        nGt = self.num_g_tiles
        assert G % nGt == 0, "B*C must be divisible by num_g_tiles"
        Gt = G // nGt

        WIN, WOUT, STEP = self.win_px, self.wout_px, self.step_px
        RW, CW, NW = self.num_row_windows, self.num_col_windows, self.num_windows

        # Native layout: (B*C, H, W) is a FREE reshape of NCHW -- no transpose pass.
        x_g = x.reshape(G, H, W)

        scratch_shapes = [pltpu.VMEM((Gt, WIN, W), x.dtype),   # row strip
                          pltpu.SemaphoreType.DMA(())]

        if self.needs_resize:
            kernel = functools.partial(_winsplit_resize_kernel,
                                       win=WIN, wout=WOUT, step=STEP, cw=CW, gt=Gt)
            # Tiny grid-invariant weights; double-buffering them is negligible.
            rr = self.r_row.astype(x.dtype)        # (WOUT, WIN)
            rc = self.r_col_t.astype(x.dtype)      # (WIN, WOUT)
            in_specs = [
                pl.BlockSpec(memory_space=pl.ANY),                       # image in HBM
                pl.BlockSpec((WOUT, WIN), lambda gi, ri: (0, 0)),        # R
                pl.BlockSpec((WIN, WOUT), lambda gi, ri: (0, 0)),        # R^T
            ]
            args = (x_g, rr, rc)
        else:
            kernel = functools.partial(_winsplit_copy_kernel,
                                       win=WIN, step=STEP, cw=CW, gt=Gt)
            in_specs = [pl.BlockSpec(memory_space=pl.ANY)]
            args = (x_g,)

        out = pl.pallas_call(
            kernel,
            out_shape=jax.ShapeDtypeStruct((NW, G, WOUT, WOUT), x.dtype),
            grid_spec=pltpu.PrefetchScalarGridSpec(
                num_scalar_prefetch=0,
                grid=(nGt, RW),
                in_specs=in_specs,
                # windows of row-window ri occupy [ri*CW, (ri+1)*CW) -> block ri.
                out_specs=pl.BlockSpec((CW, Gt, WOUT, WOUT),
                                       lambda gi, ri: (ri, gi, 0, 0)),
                scratch_shapes=scratch_shapes,
            ),
            compiler_params=pltpu.CompilerParams(
                dimension_semantics=("parallel", "parallel"),
                vmem_limit_bytes=64 * 1024 * 1024),
        )(*args)

        # Pure reshapes only: (NW, B*C, WOUT, WOUT) -> (NW*B, C, WOUT, WOUT),
        # the same ordering as torch.stack(...).view(-1, C, H, H).
        out = out.reshape(NW, B, C, WOUT, WOUT).reshape(NW * B, C, WOUT, WOUT)
        return out, self.pmasklist


def _bilinear_ac_ref(xs, n_out):
    """Independent gather/lerp bilinear (align_corners=True) reference."""
    n_in = xs.shape[-1]
    src = jnp.arange(n_out) * (n_in - 1) / (n_out - 1)
    lo = jnp.clip(jnp.floor(src).astype(jnp.int32), 0, n_in - 1)
    hi = jnp.minimum(lo + 1, n_in - 1)
    f = (src - lo).astype(xs.dtype)
    xc = xs[..., lo] * (1.0 - f) + xs[..., hi] * f                           # cols
    xr = xc[..., lo, :] * (1.0 - f)[:, None] + xc[..., hi, :] * f[:, None]   # rows
    return xr


def _reference(mod, x):
    B, C, _, _ = x.shape
    WIN = mod.win_px
    wins = [x[:, :, r0:r1, c0:c1] for (r0, r1, c0, c1) in mod.masklist]
    ref = jnp.stack(wins, axis=0).reshape(-1, C, WIN, WIN)
    if mod.needs_resize:
        ref = _bilinear_ac_ref(ref, mod.wout_px)
    return ref


if __name__ == "__main__":
    key = jax.random.PRNGKey(0)

    # Small shapes consistent with the module: 16x16 image, 4-px patches,
    # 2-patch windows (8 px), 1-patch stride (4 px).
    B, C = 2, 4
    imgsize, patchsize, winsize, stride = 16, 4, 2, 1
    x = jax.random.normal(key, (B, C, imgsize, imgsize), dtype=jnp.float32)

    # ---- test 1: resize path (winZipSize != winsize) ----
    mod1 = WinSplit(imgsize=imgsize, patchsize=patchsize, winsize=winsize,
                    stride=stride, winZipSize=3)
    out1, pm1 = mod1.forward(x)
    out1 = jax.block_until_ready(out1)
    ref1 = _reference(mod1, x)
    assert out1.shape == ref1.shape == (mod1.num_windows * B, C,
                                        mod1.wout_px, mod1.wout_px)
    assert pm1 == mod1.pmasklist
    err1 = float(jnp.max(jnp.abs(out1 - ref1)))
    assert jnp.allclose(out1, ref1, atol=1e-4, rtol=1e-4), f"max abs err {err1}"

    # ---- test 2: no-resize path (winZipSize == winsize) ----
    mod2 = WinSplit(imgsize=imgsize, patchsize=patchsize, winsize=winsize,
                    stride=stride, winZipSize=winsize)
    out2, pm2 = mod2.forward(x)
    out2 = jax.block_until_ready(out2)
    ref2 = _reference(mod2, x)
    assert out2.shape == ref2.shape == (mod2.num_windows * B, C,
                                        mod2.win_px, mod2.win_px)
    assert pm2 == mod2.pmasklist
    assert jnp.allclose(out2, ref2), "copy path mismatch"

    print("KERNEL_OK")
</pallas_src>

<mosaic_0001>
module attributes {stable_mosaic.version = 11 : i64} {
  func.func @_winsplit_resize_kernel(%arg0: i32, %arg1: i32, %arg2: memref<8x16x16xf32, #tpu.memory_space<any>>, %arg3: memref<12x8xf32, #tpu.memory_space<vmem>>, %arg4: memref<8x12xf32, #tpu.memory_space<vmem>>, %arg5: memref<3x8x12x12xf32, #tpu.memory_space<vmem>>, %arg6: memref<8x8x16xf32, #tpu.memory_space<vmem>>, %arg7: memref<!tpu.dma_semaphore, #tpu.memory_space<semaphore_mem>>) attributes {dimension_semantics = [#tpu.dimension_semantics<parallel>, #tpu.dimension_semantics<parallel>], iteration_bounds = array<i64: 1, 3>, scalar_prefetch = 0 : i64, scratch_operands = 2 : i64, tpu.core_type = #tpu.core_type<tc>, window_params = [{}, {pipeline_mode = #tpu.pipeline_mode<synchronous>, transform_indices = @transform_1, window_bounds = array<i64: 12, 8>}, {pipeline_mode = #tpu.pipeline_mode<synchronous>, transform_indices = @transform_2, window_bounds = array<i64: 8, 12>}, {transform_indices = @transform_3, window_bounds = array<i64: 3, 8, 12, 12>}]} {
    %c4_i32 = arith.constant 4 : i32
    %0 = arith.muli %arg1, %c4_i32 : i32
    %c8_i32 = arith.constant 8 : i32
    %1 = arith.muli %arg0, %c8_i32 : i32
    %c0_i32 = arith.constant 0 : i32
    %2 = tpu.memref_slice %arg2[%1, %0, %c0_i32] : memref<8x16x16xf32, #tpu.memory_space<any>> -> memref<8x8x16xf32, #tpu.memory_space<any>>
    tpu.enqueue_dma source(%2 : memref<8x8x16xf32, #tpu.memory_space<any>>) target(%arg6 : memref<8x8x16xf32, #tpu.memory_space<vmem>>) target_semaphore(%arg7 : memref<!tpu.dma_semaphore, #tpu.memory_space<semaphore_mem>>)
    %c0 = arith.constant 0 : index
    %c0_0 = arith.constant 0 : index
    %3 = vector.load %arg3[%c0, %c0_0] : memref<12x8xf32, #tpu.memory_space<vmem>>, vector<12x8xf32>
    %4 = vector.shape_cast %3 : vector<12x8xf32> to vector<1x12x8xf32>
    %5 = vector.shape_cast %4 : vector<1x12x8xf32> to vector<1x12x8xf32>
    %6 = vector.broadcast %5 : vector<1x12x8xf32> to vector<8x12x8xf32>
    %c0_1 = arith.constant 0 : index
    %c0_2 = arith.constant 0 : index
    %7 = vector.load %arg4[%c0_1, %c0_2] : memref<8x12xf32, #tpu.memory_space<vmem>>, vector<8x12xf32>
    %8 = vector.shape_cast %7 : vector<8x12xf32> to vector<1x8x12xf32>
    %9 = vector.shape_cast %8 : vector<1x8x12xf32> to vector<1x8x12xf32>
    %10 = vector.broadcast %9 : vector<1x8x12xf32> to vector<8x8x12xf32>
    %c0_i32_3 = arith.constant 0 : i32
    %11 = tpu.memref_slice %arg2[%1, %0, %c0_i32_3] : memref<8x16x16xf32, #tpu.memory_space<any>> -> memref<8x8x16xf32, #tpu.memory_space<any>>
    tpu.wait_dma2 semaphore(%arg7 : memref<!tpu.dma_semaphore, #tpu.memory_space<semaphore_mem>>) src(%11 : memref<8x8x16xf32, #tpu.memory_space<any>>) dst(%arg6 : memref<8x8x16xf32, #tpu.memory_space<vmem>>)
    %c0_4 = arith.constant 0 : index
    %c0_5 = arith.constant 0 : index
    %c0_6 = arith.constant 0 : index
    %12 = vector.load %arg6[%c0_4, %c0_5, %c0_6] : memref<8x8x16xf32, #tpu.memory_space<vmem>>, vector<8x8x16xf32>
    "tpu.trace_start"() <{level = 10 : i32, message = "gpr,grw->gpw"}> : () -> ()
    %cst = arith.constant dense<0.000000e+00> : vector<8x12x16xf32>
    %13 = tpu.matmul %6, %12, %cst {dimension_numbers = #tpu.dot_dimension_numbers<[2], [1], [1], [2], [0, 0, 0, 1, 1, 2], [0], [0]>} : vector<8x12x8xf32>, vector<8x8x16xf32>, vector<8x12x16xf32> -> vector<8x12x16xf32>
    "tpu.trace_stop"() : () -> ()
    %14 = vector.extract_strided_slice %13 {offsets = [0, 0, 0], sizes = [8, 12, 8], strides = [1, 1, 1]} : vector<8x12x16xf32> to vector<8x12x8xf32>
    "tpu.trace_start"() <{level = 10 : i32, message = "gpc,gco->gpo"}> : () -> ()
    %cst_7 = arith.constant dense<0.000000e+00> : vector<8x12x12xf32>
    %15 = tpu.matmul %14, %10, %cst_7 {dimension_numbers = #tpu.dot_dimension_numbers<[2], [1], [1], [2], [0, 0, 0, 1, 1, 2], [0], [0]>} : vector<8x12x8xf32>, vector<8x8x12xf32>, vector<8x12x12xf32> -> vector<8x12x12xf32>
    "tpu.trace_stop"() : () -> ()
    %c0_8 = arith.constant 0 : index
    %c0_9 = arith.constant 0 : index
    %c0_10 = arith.constant 0 : index
    %c0_11 = arith.constant 0 : index
    %16 = vector.load %arg5[%c0_8, %c0_9, %c0_10, %c0_11] : memref<3x8x12x12xf32, #tpu.memory_space<vmem>>, vector<1x8x12x12xf32>
    %17 = vector.shape_cast %16 : vector<1x8x12x12xf32> to vector<8x12x12xf32>
    %18 = vector.shape_cast %15 : vector<8x12x12xf32> to vector<1x8x12x12xf32>
    tpu.vector_store %arg5[%c0_8, %c0_9, %c0_10, %c0_11], %18 {strides = array<i32>} : memref<3x8x12x12xf32, #tpu.memory_space<vmem>>, vector<1x8x12x12xf32>,
    %19 = vector.extract_strided_slice %13 {offsets = [0, 0, 4], sizes = [8, 12, 8], strides = [1, 1, 1]} : vector<8x12x16xf32> to vector<8x12x8xf32>
    "tpu.trace_start"() <{level = 10 : i32, message = "gpc,gco->gpo"}> : () -> ()
    %cst_12 = arith.constant dense<0.000000e+00> : vector<8x12x12xf32>
    %20 = tpu.matmul %19, %10, %cst_12 {dimension_numbers = #tpu.dot_dimension_numbers<[2], [1], [1], [2], [0, 0, 0, 1, 1, 2], [0], [0]>} : vector<8x12x8xf32>, vector<8x8x12xf32>, vector<8x12x12xf32> -> vector<8x12x12xf32>
    "tpu.trace_stop"() : () -> ()
    %c1 = arith.constant 1 : index
    %c0_13 = arith.constant 0 : index
    %c0_14 = arith.constant 0 : index
    %c0_15 = arith.constant 0 : index
    %21 = vector.load %arg5[%c1, %c0_13, %c0_14, %c0_15] : memref<3x8x12x12xf32, #tpu.memory_space<vmem>>, vector<1x8x12x12xf32>
    %22 = vector.shape_cast %21 : vector<1x8x12x12xf32> to vector<8x12x12xf32>
    %23 = vector.shape_cast %20 : vector<8x12x12xf32> to vector<1x8x12x12xf32>
    tpu.vector_store %arg5[%c1, %c0_13, %c0_14, %c0_15], %23 {strides = array<i32>} : memref<3x8x12x12xf32, #tpu.memory_space<vmem>>, vector<1x8x12x12xf32>,
    %24 = vector.extract_strided_slice %13 {offsets = [0, 0, 8], sizes = [8, 12, 8], strides = [1, 1, 1]} : vector<8x12x16xf32> to vector<8x12x8xf32>
    "tpu.trace_start"() <{level = 10 : i32, message = "gpc,gco->gpo"}> : () -> ()
    %cst_16 = arith.constant dense<0.000000e+00> : vector<8x12x12xf32>
    %25 = tpu.matmul %24, %10, %cst_16 {dimension_numbers = #tpu.dot_dimension_numbers<[2], [1], [1], [2], [0, 0, 0, 1, 1, 2], [0], [0]>} : vector<8x12x8xf32>, vector<8x8x12xf32>, vector<8x12x12xf32> -> vector<8x12x12xf32>
    "tpu.trace_stop"() : () -> ()
    %c2 = arith.constant 2 : index
    %c0_17 = arith.constant 0 : index
    %c0_18 = arith.constant 0 : index
    %c0_19 = arith.constant 0 : index
    %26 = vector.load %arg5[%c2, %c0_17, %c0_18, %c0_19] : memref<3x8x12x12xf32, #tpu.memory_space<vmem>>, vector<1x8x12x12xf32>
    %27 = vector.shape_cast %26 : vector<1x8x12x12xf32> to vector<8x12x12xf32>
    %28 = vector.shape_cast %25 : vector<8x12x12xf32> to vector<1x8x12x12xf32>
    tpu.vector_store %arg5[%c2, %c0_17, %c0_18, %c0_19], %28 {strides = array<i32>} : memref<3x8x12x12xf32, #tpu.memory_space<vmem>>, vector<1x8x12x12xf32>,
    return
  }
  func.func @transform_1(%arg0: i32, %arg1: i32) -> (i32, i32) {
    %c0_i32 = arith.constant 0 : i32
    %c0_i32_0 = arith.constant 0 : i32
    %c0_i32_1 = arith.constant 0 : i32
    return %c0_i32, %c0_i32_0 : i32, i32
  }
  func.func @transform_2(%arg0: i32, %arg1: i32) -> (i32, i32) {
    %c0_i32 = arith.constant 0 : i32
    %c0_i32_0 = arith.constant 0 : i32
    %c0_i32_1 = arith.constant 0 : i32
    return %c0_i32, %c0_i32_0 : i32, i32
  }
  func.func @transform_3(%arg0: i32, %arg1: i32) -> (i32, i32, i32, i32) {
    %c0_i32 = arith.constant 0 : i32
    %c0_i32_0 = arith.constant 0 : i32
    %c0_i32_1 = arith.constant 0 : i32
    return %arg1, %arg0, %c0_i32, %c0_i32_0 : i32, i32, i32, i32
  }
}

</mosaic_0001>

<bundles_post_ra>
// kernel: tpu_custom_call.1
= control target key start
LH: loop header
LB: loop body
LE: loop exit
PB: predicated region body
PF: predicated region fallthrough
CT: control target
= control target key end

     0   :  { %s3372_s12 = smov 0   ;;  %s3374_s13 = smov 0   ;;  %s3690_s0 = inlined_call_operand.hbm [shape: f32[8,16,16], index: 0, kind: input, shape index: {}]   ;;  %s3691_s1 = inlined_call_operand.vmem [shape: f32[12,8], index: 1, kind: input, shape index: {}]   ;;  %s3692_s2 = inlined_call_operand.vmem [shape: f32[8,12], index: 2, kind: input, shape index: {}]   ;;  %s3693_s3 = inlined_call_operand.vmem [shape: f32[9,8,12,12], index: 3, kind: output, shape index: {}]  }
   0x1   :  { %s3376_s14 = smov 0  }
   0x2 LB: > { %s22_s15 = sadd.s32 1, %s3340_s13  ;;  %p2906_p0 = scmp.ge.s32.totalorder %s3344_s14, 1  ;;  %s3344_s14 = sphi %s3376_s14, %s13_s14   ;;  %s3340_s13 = sphi %s3374_s13, %s3695_s13   ;;  %s3336_s12 = sphi %s3372_s12, %s3694_s12  }
   0x3   : > { %p23_p1 = scmp.ge.s32.totalorder %s22_s15, 3  ;;  %p117_p2 = scmp.lt.s32.totalorder %s3344_s14, 4 }
   0x5   : > { %s3697_s15 = smov (%p23_p1, %s22_s15), 0  ;;  %p118_p3 = pnand %p2906_p0, %p117_p2 }
   0x6   : > { %s140_s16 = smul.u32 (!%p118_p3), 3, %s3336_s12  ;;  %s3011_s17 = sshll.u32 (!%p118_p3), %s3336_s12, 6 }
   0x7   : > { %121 = sbr.rel (%p118_p3) target bundleno = 598 (0x256), region = 28  ;;  %s3408_s26 = scalar_lea.hbm (!%p118_p3), %s3690_s0, %s3011_s17 }
   0x8   : > { %p142_p4 = scmp.lt.s32.totalorder (!%p118_p3), %s140_s16, 8  ;;  %s3346_s27 = smov (!%p118_p3), [#allocation2]  }
   0x9   : > { %s160_s28 = sshll.u32 (!%p118_p3), %s3346_s27, 4  ;;  %s3298_s6 = scalar_lea.hbm (!%p118_p3), %s3408_s26, 1024  ;;  %s161_s28 = int_to_ptr.vmem [resolvable:$true] %s160_s28 }
   0xa   : > { %p3299_p5 = scmp.ne.s32.totalorder (!%p118_p3), %s3408_s26, %s3298_s6  ;;  %s3300_s9 = scalar_lea.hbm (!%p118_p3), %s3690_s0, 2048 }
   0xb   : > { %p3301_p6 = scmp.lt.s32.totalorder (!%p118_p3), %s3408_s26, %s3690_s0  ;;  %p3302_p7 = scmp.lt.s32.totalorder (!%p118_p3), %s3300_s9, %s3298_s6 }
   0xc   : > { %v3393_v0 = vld [vmem:[%s3691_s1] sm:$0xff]  ;;  %v3398_v1 = vld [vmem:[%s3691_s1 + $0x8] sm:$0xf]  ;;  %s3699_s16 = smov (!%p142_p4, %s140_s16), 8 }
   0xd   : > { %v3403_v2 = vld [vmem:[%s3692_s2] sm:$0xff]  ;;  %s3010_s29 = sshll.u32 %s3699_s16, 7  ;;  %p3303_p8 = por %p3302_p7, %p3301_p6 }
   0xe   : > { %s3413_s5 = scalar_lea.vmem %s3693_s3, %s3010_s29 }
   0xf   : > { %p3304_p9 = pnand %p3303_p8, %p3299_p5 }
  0x11   : > { %3307 = shalt.err (!%p3304_p9)  }
  0x12   : > { %s3308_s12 = scalar_lea.vmem %s161_s28, 1024  ;;  %p3313_p11 = scmp.lt.s32.totalorder %s161_s28, %s161_s28 }
  0x13   : > { %p3309_p10 = scmp.ne.s32.totalorder %s161_s28, %s3308_s12  ;;  %p3314_p12 = scmp.lt.s32.totalorder %s3308_s12, %s3308_s12 }
  0x15   : > { %p3315_p13 = por %p3314_p12, %p3313_p11 }
  0x17   : > { %p3316_p0 = pnand %p3315_p13, %p3309_p10 }
  0x19   : > { %3319 = shalt.err (!%p3316_p0)  }
  0x1a   : > { %s3347_s16 = smov 256   ;;  %s3348_s17 = smov 128  }
  0x1b   : > { %s3349_s18 = smov 8  }
  0x1c   : > { %163 = dma.hbm_to_vmem [thread:$0]  %s3408_s26, 1024, %s161_s28, [#allocation3], %s3347_s16, %s3348_s17, %s3349_s18 }
  0x1d   : > { %3332 = dma.done.wait [#allocation3], 1024 }
  0x1e   : > { %3333 = vsyncadd [#allocation3], 4294966272  ;;  %vm179_vm0 = vcmask 64512   ;;  %v171_v3 = vld [vmem:[#allocation2] sm:$0xff]  ;;  %v172_v4 = vld [vmem:[#allocation2 + $0x8] sm:$0xff]  ;;  %s3350_s19 = smov 120  }
  0x1f   : > { %3110 = vmatprep.mubr.msk.f32.mxu0 %vm179_vm0, %v3393_v0  ;;  %3115 = vmatprep.mubr.msk.f32.mxu1 %vm179_vm0, %v3393_v0  ;;  %v173_v5 = vld [vmem:[#allocation2 + $0x10] sm:$0xff]  ;;  %v174_v6 = vld [vmem:[#allocation2 + $0x18] sm:$0xff]  ;;  %v175_v7 = vld [vmem:[#allocation2 + $0x20] sm:$0xff]  ;;  %s3351_s20 = smov 124   ;;  %vm1436_vm1 = vcmask 93184   ;;  %vm1434_vm2 = vcmask 97280  }
  0x20   : > { %3108 = vmatprep.subr.mxu0 %v171_v3  ;;  %3113 = vmatprep.subr.mxu1 %v172_v4  ;;  %v176_v8 = vld [vmem:[#allocation2 + $0x28] sm:$0xff]  ;;  %v177_v9 = vld [vmem:[#allocation2 + $0x30] sm:$0xff]  ;;  %v178_v10 = vld [vmem:[#allocation2 + $0x38] sm:$0xff] }
  0x21   : > { %3109 = vmatpush3.msra.mxu0 %v171_v3  ;;  %3114 = vmatpush3.msra.mxu1 %v172_v4 }
  0x22   : > { %3111 = vmatmul.mubr.msk.f32.vlgmr.msra.gmra.mxu0 %vm179_vm0, %v3398_v1  ;;  %3116 = vmatmul.mubr.msk.f32.vlgmr.msra.gmra.mxu1 %vm179_vm0, %v3398_v1 }
  0x23   : > { %3118 = vmatprep.subr.mxu0 %v173_v5  ;;  %3123 = vmatprep.subr.mxu1 %v174_v6 }
  0x24   : > { %3119 = vmatpush3.msra.mxu0 %v173_v5  ;;  %3120 = vmatprep.mubr.msk.f32.mxu0 %vm179_vm0, %v3393_v0 }
  0x25   : > { %3124 = vmatpush3.msra.mxu1 %v174_v6  ;;  %3125 = vmatprep.mubr.msk.f32.mxu1 %vm179_vm0, %v3393_v0 }
  0x26   : > { %3121 = vmatmul.mubr.msk.f32.vlgmr.msra.gmra.mxu0 %vm179_vm0, %v3398_v1  ;;  %3126 = vmatmul.mubr.msk.f32.vlgmr.msra.gmra.mxu1 %vm179_vm0, %v3398_v1 }
  0x27   : > { %3128 = vmatprep.subr.mxu0 %v175_v7  ;;  %3133 = vmatprep.subr.mxu1 %v176_v8 }
  0x28   : > { %3129 = vmatpush3.msra.mxu0 %v175_v7  ;;  %3130 = vmatprep.mubr.msk.f32.mxu0 %vm179_vm0, %v3393_v0 }
  0x29   : > { %3134 = vmatpush3.msra.mxu1 %v176_v8  ;;  %3135 = vmatprep.mubr.msk.f32.mxu1 %vm179_vm0, %v3393_v0 }
  0x2a   : > { %3131 = vmatmul.mubr.msk.f32.vlgmr.msra.gmra.mxu0 %vm179_vm0, %v3398_v1  ;;  %3136 = vmatmul.mubr.msk.f32.vlgmr.msra.gmra.mxu1 %vm179_vm0, %v3398_v1 }
  0x2b   : > { %3138 = vmatprep.subr.mxu0 %v177_v9  ;;  %3143 = vmatprep.subr.mxu1 %v178_v10 }
  0x2c   : > { %3139 = vmatpush3.msra.mxu0 %v177_v9  ;;  %3140 = vmatprep.mubr.msk.f32.mxu0 %vm179_vm0, %v3393_v0 }
  0x2d   : > { %3144 = vmatpush3.msra.mxu1 %v178_v10  ;;  %3145 = vmatprep.mubr.msk.f32.mxu1 %vm179_vm0, %v3393_v0 }
  0x2e   : > { %3141 = vmatmul.mubr.msk.f32.vlgmr.msra.gmra.mxu0 %vm179_vm0, %v3398_v1  ;;  %3146 = vmatmul.mubr.msk.f32.vlgmr.msra.gmra.mxu1 %vm179_vm0, %v3398_v1 }
  0x2f   : > { %3148 = vmatprep.subr.mxu0 %v3403_v2  ;;  %3153 = vmatprep.subr.mxu1 %v3403_v2 }
  0x30   : > { %3149 = vmatpush3.msra.mxu0 %v3403_v2  ;;  %3154 = vmatpush3.msra.mxu1 %v3403_v2 }
  0x31   : > { %3158 = vmatprep.subr.mxu0 %v3403_v2  ;;  %3163 = vmatprep.subr.mxu1 %v3403_v2 }
  0xe2   : > { %v3112_v11 = vpop.f32.mrf.mxu0  ;;  %v3117_v12 = vpop.f32.mrf.mxu1 }
  0xe3   : > { %2135 = vrot.lane.b32.xlu0 %v3112_v11, %s3350_s19  ;;  %1454 = vrot.lane.b32.xlu1 %v3112_v11, %s3351_s20 }
  0xe4   : > { %v252_v13 = vpop.f32.mrf.mxu0  ;;  %v327_v14 = vpop.f32.mrf.mxu1 }
  0xe5   : > { %3150 = vmatprep.mubr.msk.f32.mxu0 %vm179_vm0, %v252_v13  ;;  %3155 = vmatprep.mubr.msk.f32.mxu1 %vm179_vm0, %v327_v14 }
  0xe6   : > { %3151 = vmatmul.mubr.msk.f32.vlgmr.msra.gmra.mxu0 %vm179_vm0, %v3112_v11  ;;  %3156 = vmatmul.mubr.msk.f32.vlgmr.msra.gmra.mxu1 %vm179_vm0, %v3117_v12  ;;  %v3122_v15 = vpop.f32.mrf.mxu0  ;;  %v3127_v16 = vpop.f32.mrf.mxu1 }
  0xe7   : > { %1537 = vrot.lane.b32.xlu1 %v3117_v12, %s3351_s20  ;;  %1452 = vrot.lane.b32.xlu0 %v252_v13, %s3351_s20 }
  0xe8   : > { %v477_v17 = vpop.f32.mrf.mxu1  ;;  %v402_v18 = vpop.f32.mrf.mxu0  ;;  %3159 = vmatpush3.msra.mxu0 %v3403_v2  ;;  %3164 = vmatpush3.msra.mxu1 %v3403_v2 }
  0xe9   : > { %3160 = vmatprep.mubr.msk.f32.mxu0 %vm179_vm0, %v402_v18  ;;  %3165 = vmatprep.mubr.msk.f32.mxu1 %vm179_vm0, %v477_v17 }
  0xea   : > { %3161 = vmatmul.mubr.msk.f32.vlgmr.msra.gmra.mxu0 %vm179_vm0, %v3122_v15  ;;  %3166 = vmatmul.mubr.msk.f32.vlgmr.msra.gmra.mxu1 %vm179_vm0, %v3127_v16  ;;  %v3132_v19 = vpop.f32.mrf.mxu0  ;;  %v3137_v20 = vpop.f32.mrf.mxu1 }
  0xeb   : > { %2218 = vrot.lane.b32.xlu1 %v3117_v12, %s3350_s19  ;;  %1535 = vrot.lane.b32.xlu0 %v327_v14, %s3351_s20 }
  0xec   : > { %v627_v21 = vpop.f32.mrf.mxu1  ;;  %3173 = vmatprep.subr.mxu1 %v3403_v2  ;;  %3168 = vmatprep.subr.mxu0 %v3403_v2  ;;  %v552_v22 = vpop.f32.mrf.mxu0 }
  0xed   : > { %3169 = vmatpush3.msra.mxu0 %v3403_v2  ;;  %3170 = vmatprep.mubr.msk.f32.mxu0 %vm179_vm0, %v552_v22 }
  0xee   : > { %3174 = vmatpush3.msra.mxu1 %v3403_v2  ;;  %3175 = vmatprep.mubr.msk.f32.mxu1 %vm179_vm0, %v627_v21  ;;  %v3142_v23 = vpop.f32.mrf.mxu0  ;;  %v3147_v24 = vpop.f32.mrf.mxu1 }
  0xef   : > { %2216 = vrot.lane.b32.xlu1 %v327_v14, %s3350_s19  ;;  %2133 = vrot.lane.b32.xlu0 %v252_v13, %s3350_s19 }
  0xf0   : > { %3171 = vmatmul.mubr.msk.f32.vlgmr.msra.gmra.mxu0 %vm179_vm0, %v3132_v19  ;;  %3176 = vmatmul.mubr.msk.f32.vlgmr.msra.gmra.mxu1 %vm179_vm0, %v3137_v20  ;;  %v702_v25 = vpop.f32.mrf.mxu0  ;;  %v777_v26 = vpop.f32.mrf.mxu1 }
  0xf1   : > { %3183 = vmatprep.subr.mxu1 %v3403_v2  ;;  %3178 = vmatprep.subr.mxu0 %v3403_v2 }
  0xf2   : > { %3179 = vmatpush3.msra.mxu0 %v3403_v2  ;;  %3180 = vmatprep.mubr.msk.f32.mxu0 %vm179_vm0, %v702_v25 }
  0xf3   : > { %1703 = vrot.lane.b32.xlu1 %v3127_v16, %s3351_s20  ;;  %1620 = vrot.lane.b32.xlu0 %v3122_v15, %s3351_s20 }
  0xf4   : > { %3184 = vmatpush3.msra.mxu1 %v3403_v2  ;;  %3185 = vmatprep.mubr.msk.f32.mxu1 %vm179_vm0, %v777_v26 }
  0xf5   : > { %3181 = vmatmul.mubr.msk.f32.vlgmr.msra.gmra.mxu0 %vm179_vm0, %v3142_v23  ;;  %3186 = vmatmul.mubr.msk.f32.vlgmr.msra.gmra.mxu1 %vm179_vm0, %v3147_v24 }
  0xf6   : > { %3188 = vmatprep.subr.mxu0 %v3403_v2  ;;  %3193 = vmatprep.subr.mxu1 %v3403_v2 }
  0xf7   : > { %1701 = vrot.lane.b32.xlu1 %v477_v17, %s3351_s20  ;;  %1618 = vrot.lane.b32.xlu0 %v402_v18, %s3351_s20 }
  0xf8   : > { %3189 = vmatpush3.msra.mxu0 %v3403_v2  ;;  %3194 = vmatpush3.msra.mxu1 %v3403_v2 }
  0xf9   : > { %3203 = vmatprep.subr.mxu1 %v3403_v2  ;;  %3198 = vmatprep.subr.mxu0 %v3403_v2 }
  0xfb   : > { %2382 = vrot.lane.b32.xlu1 %v477_v17, %s3350_s19  ;;  %2299 = vrot.lane.b32.xlu0 %v402_v18, %s3350_s19 }
  0xff   : > { %1869 = vrot.lane.b32.xlu1 %v3137_v20, %s3351_s20  ;;  %1786 = vrot.lane.b32.xlu0 %v3132_v19, %s3351_s20 }
 0x103   : > { %1867 = vrot.lane.b32.xlu1 %v627_v21, %s3351_s20  ;;  %1784 = vrot.lane.b32.xlu0 %v552_v22, %s3351_s20 }
 0x107   : > { %2035 = vrot.lane.b32.xlu1 %v3147_v24, %s3351_s20  ;;  %1952 = vrot.lane.b32.xlu0 %v3142_v23, %s3351_s20 }
 0x10b   : > { %2033 = vrot.lane.b32.xlu1 %v777_v26, %s3351_s20  ;;  %1950 = vrot.lane.b32.xlu0 %v702_v25, %s3351_s20 }
 0x10f   : > { %2384 = vrot.lane.b32.xlu1 %v3127_v16, %s3350_s19  ;;  %2301 = vrot.lane.b32.xlu0 %v3122_v15, %s3350_s19 }
 0x113   : > { %2548 = vrot.lane.b32.xlu1 %v627_v21, %s3350_s19  ;;  %2465 = vrot.lane.b32.xlu0 %v552_v22, %s3350_s19 }
 0x117   : > { %2550 = vrot.lane.b32.xlu1 %v3137_v20, %s3350_s19  ;;  %2467 = vrot.lane.b32.xlu0 %v3132_v19, %s3350_s19 }
 0x11b   : > { %2714 = vrot.lane.b32.xlu1 %v777_v26, %s3350_s19  ;;  %2631 = vrot.lane.b32.xlu0 %v702_v25, %s3350_s19 }
 0x11f   : > { %2716 = vrot.lane.b32.xlu1 %v3147_v24, %s3350_s19  ;;  %2633 = vrot.lane.b32.xlu0 %v3142_v23, %s3350_s19 }
 0x155   : > { %v2136_v27 = vpop.permute.xlu0 %2135  ;;  %v1455_v28 = vpop.permute.xlu1 %1454 }
 0x159   : > { %v1538_v29 = vpop.permute.xlu1 %1537  ;;  %v1453_v30 = vpop.permute.xlu0 %1452 }
 0x15a   : > { %3190 = vmatprep.mubr.msk.f32.mxu0 %vm179_vm0, %v1453_v30 }
 0x15b   : > { %3191 = vmatmul.mubr.msk.f32.vlgmr.msra.gmra.mxu0 %vm179_vm0, %v1455_v28 }
 0x15c   : > { %3199 = vmatpush3.msra.mxu0 %v3403_v2 }
 0x15d   : > { %v2219_v31 = vpop.permute.xlu1 %2218  ;;  %v1536_v32 = vpop.permute.xlu0 %1535  ;;  %3208 = vmatprep.subr.mxu0 %v3403_v2 }
 0x15e   : > { %3195 = vmatprep.mubr.msk.f32.mxu1 %vm179_vm0, %v1536_v32 }
 0x15f   : > { %3196 = vmatmul.mubr.msk.f32.vlgmr.msra.gmra.mxu1 %vm179_vm0, %v1538_v29 }
 0x160   : > { %3204 = vmatpush3.msra.mxu1 %v3403_v2 }
 0x161   : > { %v2217_v33 = vpop.permute.xlu1 %2216  ;;  %v2134_v34 = vpop.permute.xlu0 %2133  ;;  %3213 = vmatprep.subr.mxu1 %v3403_v2 }
 0x165   : > { %v1704_v35 = vpop.permute.xlu1 %1703  ;;  %v1621_v36 = vpop.permute.xlu0 %1620 }
 0x169   : > { %v1702_v37 = vpop.permute.xlu1 %1701  ;;  %v1619_v38 = vpop.permute.xlu0 %1618 }
 0x16a   : > { %3200 = vmatprep.mubr.msk.f32.mxu0 %vm179_vm0, %v1619_v38  ;;  %3205 = vmatprep.mubr.msk.f32.mxu1 %vm179_vm0, %v1702_v37 }
 0x16b   : > { %3201 = vmatmul.mubr.msk.f32.vlgmr.msra.gmra.mxu0 %vm179_vm0, %v1621_v36  ;;  %3206 = vmatmul.mubr.msk.f32.vlgmr.msra.gmra.mxu1 %vm179_vm0, %v1704_v35 }
 0x16c   : > { %3209 = vmatpush3.msra.mxu0 %v3403_v2  ;;  %3214 = vmatpush3.msra.mxu1 %v3403_v2 }
 0x16d   : > { %v2383_v39 = vpop.permute.xlu1 %2382  ;;  %v2300_v40 = vpop.permute.xlu0 %2299  ;;  %3223 = vmatprep.subr.mxu1 %v3403_v2  ;;  %3218 = vmatprep.subr.mxu0 %v3403_v2 }
 0x171   : > { %v1870_v41 = vpop.permute.xlu1 %1869  ;;  %v1787_v42 = vpop.permute.xlu0 %1786 }
 0x175   : > { %v1868_v43 = vpop.permute.xlu1 %1867  ;;  %v1785_v44 = vpop.permute.xlu0 %1784 }
 0x176   : > { %3210 = vmatprep.mubr.msk.f32.mxu0 %vm179_vm0, %v1785_v44  ;;  %3215 = vmatprep.mubr.msk.f32.mxu1 %vm179_vm0, %v1868_v43 }
 0x177   : > { %3211 = vmatmul.mubr.msk.f32.vlgmr.msra.gmra.mxu0 %vm179_vm0, %v1787_v42  ;;  %3216 = vmatmul.mubr.msk.f32.vlgmr.msra.gmra.mxu1 %vm179_vm0, %v1870_v41 }
 0x178   : > { %3219 = vmatpush3.msra.mxu0 %v3403_v2  ;;  %3224 = vmatpush3.msra.mxu1 %v3403_v2 }
 0x179   : > { %v2036_v45 = vpop.permute.xlu1 %2035  ;;  %v1953_v46 = vpop.permute.xlu0 %1952  ;;  %3233 = vmatprep.subr.mxu1 %v3403_v2  ;;  %3228 = vmatprep.subr.mxu0 %v3403_v2 }
 0x17d   : > { %v2034_v47 = vpop.permute.xlu1 %2033  ;;  %v1951_v48 = vpop.permute.xlu0 %1950 }
 0x17e   : > { %3220 = vmatprep.mubr.msk.f32.mxu0 %vm179_vm0, %v1951_v48  ;;  %3225 = vmatprep.mubr.msk.f32.mxu1 %vm179_vm0, %v2034_v47 }
 0x17f   : > { %3221 = vmatmul.mubr.msk.f32.vlgmr.msra.gmra.mxu0 %vm179_vm0, %v1953_v46  ;;  %3226 = vmatmul.mubr.msk.f32.vlgmr.msra.gmra.mxu1 %vm179_vm0, %v2036_v45 }
 0x180   : > { %3230 = vmatprep.mubr.msk.f32.mxu0 %vm179_vm0, %v2134_v34  ;;  %3235 = vmatprep.mubr.msk.f32.mxu1 %vm179_vm0, %v2217_v33 }
 0x181   : > { %v2385_v49 = vpop.permute.xlu1 %2384  ;;  %v2302_v50 = vpop.permute.xlu0 %2301  ;;  %3229 = vmatpush3.msra.mxu0 %v3403_v2  ;;  %3234 = vmatpush3.msra.mxu1 %v3403_v2 }
 0x182   : > { %3243 = vmatprep.subr.mxu1 %v3403_v2  ;;  %3238 = vmatprep.subr.mxu0 %v3403_v2 }
 0x183   : > { %3231 = vmatmul.mubr.msk.f32.vlgmr.msra.gmra.mxu0 %vm179_vm0, %v2136_v27  ;;  %3236 = vmatmul.mubr.msk.f32.vlgmr.msra.gmra.mxu1 %vm179_vm0, %v2219_v31 }
 0x184   : > { %3240 = vmatprep.mubr.msk.f32.mxu0 %vm179_vm0, %v2300_v40  ;;  %3245 = vmatprep.mubr.msk.f32.mxu1 %vm179_vm0, %v2383_v39 }
 0x185   : > { %v2549_v51 = vpop.permute.xlu1 %2548  ;;  %v2466_v52 = vpop.permute.xlu0 %2465  ;;  %3239 = vmatpush3.msra.mxu0 %v3403_v2  ;;  %3244 = vmatpush3.msra.mxu1 %v3403_v2 }
 0x186   : > { %3253 = vmatprep.subr.mxu1 %v3403_v2  ;;  %3248 = vmatprep.subr.mxu0 %v3403_v2 }
 0x187   : > { %3241 = vmatmul.mubr.msk.f32.vlgmr.msra.gmra.mxu0 %vm179_vm0, %v2302_v50  ;;  %3246 = vmatmul.mubr.msk.f32.vlgmr.msra.gmra.mxu1 %vm179_vm0, %v2385_v49 }
 0x188   : > { %3250 = vmatprep.mubr.msk.f32.mxu0 %vm179_vm0, %v2466_v52  ;;  %3255 = vmatprep.mubr.msk.f32.mxu1 %vm179_vm0, %v2549_v51 }
 0x189   : > { %v2551_v53 = vpop.permute.xlu1 %2550  ;;  %v2468_v54 = vpop.permute.xlu0 %2467  ;;  %3249 = vmatpush3.msra.mxu0 %v3403_v2  ;;  %3254 = vmatpush3.msra.mxu1 %v3403_v2 }
 0x18a   : > { %3263 = vmatprep.subr.mxu1 %v3403_v2  ;;  %3258 = vmatprep.subr.mxu0 %v3403_v2 }
 0x18b   : > { %3251 = vmatmul.mubr.msk.f32.vlgmr.msra.gmra.mxu0 %vm179_vm0, %v2468_v54  ;;  %3256 = vmatmul.mubr.msk.f32.vlgmr.msra.gmra.mxu1 %vm179_vm0, %v2551_v53 }
 0x18c   : > { %3259 = vmatpush3.msra.mxu0 %v3403_v2  ;;  %3264 = vmatpush3.msra.mxu1 %v3403_v2 }
 0x18d   : > { %v2715_v55 = vpop.permute.xlu1 %2714  ;;  %v2632_v56 = vpop.permute.xlu0 %2631 }
 0x18e   : > { %3260 = vmatprep.mubr.msk.f32.mxu0 %vm179_vm0, %v2632_v56  ;;  %3265 = vmatprep.mubr.msk.f32.mxu1 %vm179_vm0, %v2715_v55 }
 0x191   : > { %v2717_v57 = vpop.permute.xlu1 %2716  ;;  %v2634_v58 = vpop.permute.xlu0 %2633 }
 0x192   : > { %3261 = vmatmul.mubr.msk.f32.vlgmr.msra.gmra.mxu0 %vm179_vm0, %v2634_v58  ;;  %3266 = vmatmul.mubr.msk.f32.vlgmr.msra.gmra.mxu1 %vm179_vm0, %v2717_v57 }
 0x1a6   : > { %v3152_v59 = vpop.f32.mrf.mxu0  ;;  %v3157_v60 = vpop.f32.mrf.mxu1 }
 0x1a7   : > { %1437 = vst.msk [vmem:[%s3413_s5 + $0x8] sm:$0xf] %vm1436_vm1, %v3152_v59  ;;  %1439 = vst.msk [vmem:[%s3413_s5 + $0x18] sm:$0xf] %vm1436_vm1, %v3157_v60 }
 0x1a8   : > { %v858_v61 = vpop.f32.mrf.mxu0  ;;  %v939_v62 = vpop.f32.mrf.mxu1 }
 0x1a9   : > { %1435 = vst.msk [vmem:[%s3413_s5] sm:$0xff] %vm1434_vm2, %v858_v61  ;;  %1438 = vst.msk [vmem:[%s3413_s5 + $0x10] sm:$0xff] %vm1434_vm2, %v939_v62 }
 0x1aa   : > { %v3162_v63 = vpop.f32.mrf.mxu0  ;;  %v3167_v0 = vpop.f32.mrf.mxu1 }
 0x1ab   : > { %1441 = vst.msk [vmem:[%s3413_s5 + $0x28] sm:$0xf] %vm1436_vm1, %v3162_v63  ;;  %1443 = vst.msk [vmem:[%s3413_s5 + $0x38] sm:$0xf] %vm1436_vm1, %v3167_v0 }
 0x1ac   : > { %v1020_v1 = vpop.f32.mrf.mxu0  ;;  %v1101_v2 = vpop.f32.mrf.mxu1 }
 0x1ad   : > { %1440 = vst.msk [vmem:[%s3413_s5 + $0x20] sm:$0xff] %vm1434_vm2, %v1020_v1  ;;  %1442 = vst.msk [vmem:[%s3413_s5 + $0x30] sm:$0xff] %vm1434_vm2, %v1101_v2 }
 0x1b0   : > { %v3172_v3 = vpop.f32.mrf.mxu0  ;;  %v3177_v4 = vpop.f32.mrf.mxu1 }
 0x1b1   : > { %1445 = vst.msk [vmem:[%s3413_s5 + $0x48] sm:$0xf] %vm1436_vm1, %v3172_v3  ;;  %1447 = vst.msk [vmem:[%s3413_s5 + $0x58] sm:$0xf] %vm1436_vm1, %v3177_v4 }
 0x1b2   : > { %v1182_v5 = vpop.f32.mrf.mxu0  ;;  %v1263_v6 = vpop.f32.mrf.mxu1 }
 0x1b3   : > { %1444 = vst.msk [vmem:[%s3413_s5 + $0x40] sm:$0xff] %vm1434_vm2, %v1182_v5  ;;  %1446 = vst.msk [vmem:[%s3413_s5 + $0x50] sm:$0xff] %vm1434_vm2, %v1263_v6 }
 0x1b5   : > { %v3182_v7 = vpop.f32.mrf.mxu0  ;;  %v3187_v8 = vpop.f32.mrf.mxu1 }
 0x1b6   : > { %1449 = vst.msk [vmem:[%s3413_s5 + $0x68] sm:$0xf] %vm1436_vm1, %v3182_v7  ;;  %1451 = vst.msk [vmem:[%s3413_s5 + $0x78] sm:$0xf] %vm1436_vm1, %v3187_v8 }
 0x1b7   : > { %v1344_v9 = vpop.f32.mrf.mxu0  ;;  %v1425_v10 = vpop.f32.mrf.mxu1 }
 0x1b8   : > { %1448 = vst.msk [vmem:[%s3413_s5 + $0x60] sm:$0xff] %vm1434_vm2, %v1344_v9  ;;  %1450 = vst.msk [vmem:[%s3413_s5 + $0x70] sm:$0xff] %vm1434_vm2, %v1425_v10 }
 0x21b   : > { %v3192_v11 = vpop.f32.mrf.mxu0 }
 0x21c   : > { %2960 = vst.msk [vmem:[%s3413_s5 + $0x88] sm:$0xf] %vm1436_vm1, %v3192_v11 }
 0x21d   : > { %v1526_v12 = vpop.f32.mrf.mxu0 }
 0x21e   : > { %2959 = vst.msk [vmem:[%s3413_s5 + $0x80] sm:$0xff] %vm1434_vm2, %v1526_v12 }
 0x21f   : > { %v3197_v13 = vpop.f32.mrf.mxu1 }
 0x220   : > { %2962 = vst.msk [vmem:[%s3413_s5 + $0x98] sm:$0xf] %vm1436_vm1, %v3197_v13 }
 0x221   : > { %v1609_v14 = vpop.f32.mrf.mxu1 }
 0x222   : > { %2961 = vst.msk [vmem:[%s3413_s5 + $0x90] sm:$0xff] %vm1434_vm2, %v1609_v14 }
 0x22b   : > { %v3202_v15 = vpop.f32.mrf.mxu0  ;;  %v3207_v16 = vpop.f32.mrf.mxu1 }
 0x22c   : > { %2964 = vst.msk [vmem:[%s3413_s5 + $0xa8] sm:$0xf] %vm1436_vm1, %v3202_v15  ;;  %2966 = vst.msk [vmem:[%s3413_s5 + $0xb8] sm:$0xf] %vm1436_vm1, %v3207_v16 }
 0x22d   : > { %v1692_v17 = vpop.f32.mrf.mxu0  ;;  %v1775_v18 = vpop.f32.mrf.mxu1 }
 0x22e   : > { %2963 = vst.msk [vmem:[%s3413_s5 + $0xa0] sm:$0xff] %vm1434_vm2, %v1692_v17  ;;  %2965 = vst.msk [vmem:[%s3413_s5 + $0xb0] sm:$0xff] %vm1434_vm2, %v1775_v18 }
 0x237   : > { %v3212_v19 = vpop.f32.mrf.mxu0  ;;  %v3217_v20 = vpop.f32.mrf.mxu1 }
 0x238   : > { %2968 = vst.msk [vmem:[%s3413_s5 + $0xc8] sm:$0xf] %vm1436_vm1, %v3212_v19  ;;  %2970 = vst.msk [vmem:[%s3413_s5 + $0xd8] sm:$0xf] %vm1436_vm1, %v3217_v20 }
 0x239   : > { %v1858_v21 = vpop.f32.mrf.mxu0  ;;  %v1941_v22 = vpop.f32.mrf.mxu1 }
 0x23a   : > { %2967 = vst.msk [vmem:[%s3413_s5 + $0xc0] sm:$0xff] %vm1434_vm2, %v1858_v21  ;;  %2969 = vst.msk [vmem:[%s3413_s5 + $0xd0] sm:$0xff] %vm1434_vm2, %v1941_v22 }
 0x23f   : > { %v3222_v23 = vpop.f32.mrf.mxu0  ;;  %v3227_v24 = vpop.f32.mrf.mxu1 }
 0x240   : > { %2972 = vst.msk [vmem:[%s3413_s5 + $0xe8] sm:$0xf] %vm1436_vm1, %v3222_v23  ;;  %2974 = vst.msk [vmem:[%s3413_s5 + $0xf8] sm:$0xf] %vm1436_vm1, %v3227_v24 }
 0x241   : > { %v2024_v25 = vpop.f32.mrf.mxu0  ;;  %v2107_v26 = vpop.f32.mrf.mxu1 }
 0x242   : > { %2971 = vst.msk [vmem:[%s3413_s5 + $0xe0] sm:$0xff] %vm1434_vm2, %v2024_v25  ;;  %2973 = vst.msk [vmem:[%s3413_s5 + $0xf0] sm:$0xff] %vm1434_vm2, %v2107_v26 }
 0x243   : > { %v3232_v27 = vpop.f32.mrf.mxu0  ;;  %v3237_v28 = vpop.f32.mrf.mxu1 }
 0x244   : > { %2992 = vst.msk [vmem:[%s3413_s5 + $0x108] sm:$0xf] %vm1436_vm1, %v3232_v27  ;;  %2994 = vst.msk [vmem:[%s3413_s5 + $0x118] sm:$0xf] %vm1436_vm1, %v3237_v28 }
 0x245   : > { %v2207_v29 = vpop.f32.mrf.mxu0  ;;  %v2290_v30 = vpop.f32.mrf.mxu1 }
 0x246   : > { %2991 = vst.msk [vmem:[%s3413_s5 + $0x100] sm:$0xff] %vm1434_vm2, %v2207_v29  ;;  %2993 = vst.msk [vmem:[%s3413_s5 + $0x110] sm:$0xff] %vm1434_vm2, %v2290_v30 }
 0x247   : > { %v3242_v31 = vpop.f32.mrf.mxu0  ;;  %v3247_v32 = vpop.f32.mrf.mxu1 }
 0x248   : > { %2996 = vst.msk [vmem:[%s3413_s5 + $0x128] sm:$0xf] %vm1436_vm1, %v3242_v31  ;;  %2998 = vst.msk [vmem:[%s3413_s5 + $0x138] sm:$0xf] %vm1436_vm1, %v3247_v32 }
 0x249   : > { %v2373_v33 = vpop.f32.mrf.mxu0  ;;  %v2456_v34 = vpop.f32.mrf.mxu1 }
 0x24a   : > { %2995 = vst.msk [vmem:[%s3413_s5 + $0x120] sm:$0xff] %vm1434_vm2, %v2373_v33  ;;  %2997 = vst.msk [vmem:[%s3413_s5 + $0x130] sm:$0xff] %vm1434_vm2, %v2456_v34 }
 0x24b   : > { %v3252_v35 = vpop.f32.mrf.mxu0  ;;  %v3257_v36 = vpop.f32.mrf.mxu1 }
 0x24c   : > { %3000 = vst.msk [vmem:[%s3413_s5 + $0x148] sm:$0xf] %vm1436_vm1, %v3252_v35  ;;  %3002 = vst.msk [vmem:[%s3413_s5 + $0x158] sm:$0xf] %vm1436_vm1, %v3257_v36 }
 0x24d   : > { %v2539_v37 = vpop.f32.mrf.mxu0  ;;  %v2622_v38 = vpop.f32.mrf.mxu1 }
 0x24e   : > { %2999 = vst.msk [vmem:[%s3413_s5 + $0x140] sm:$0xff] %vm1434_vm2, %v2539_v37  ;;  %3001 = vst.msk [vmem:[%s3413_s5 + $0x150] sm:$0xff] %vm1434_vm2, %v2622_v38 }
 0x252   : > { %v3262_v39 = vpop.f32.mrf.mxu0  ;;  %v3267_v40 = vpop.f32.mrf.mxu1 }
 0x253   : > { %3004 = vst.msk [vmem:[%s3413_s5 + $0x168] sm:$0xf] %vm1436_vm1, %v3262_v39  ;;  %3006 = vst.msk [vmem:[%s3413_s5 + $0x178] sm:$0xf] %vm1436_vm1, %v3267_v40 }
 0x254   : > { %v2705_v41 = vpop.f32.mrf.mxu0  ;;  %v2788_v42 = vpop.f32.mrf.mxu1 }
 0x255   : > { %3003 = vst.msk [vmem:[%s3413_s5 + $0x160] sm:$0xff] %vm1434_vm2, %v2705_v41  ;;  %3005 = vst.msk [vmem:[%s3413_s5 + $0x170] sm:$0xff] %vm1434_vm2, %v2788_v42 }
 0x256 PF: > { %s13_s14 = sadd.s32 1, %s3344_s14   ;;  %s3694_s12 = smov %s3340_s13 }
 0x257   : > { %p10_p1 = scmp.ge.s32.totalorder %s13_s14, 5   ;;  %s3695_s13 = smov %s3697_s15 }
 0x259   :  { %12 = sbr.rel (!%p10_p1) target bundleno = 2 (0x2), region = 58 }
 0x25e   :  { %2849 = vsyncmov [#allocation3] }
 0x261   :  { %s2850_s21 = vpop.sfrf %2849 }
 0x262   :  { %p3009_p2 = scmp.ne.s32.totalorder %s2850_s21, 0 }
 0x264   :  { %2854 = shalt.err (%p3009_p2)  }

</bundles_post_ra>
